<compile_context>
chip_gen: v6e
topology: v6e:2x2x1
jax: 0.10.0
libtpu: 0.0.40
codegen_flags: <defaults>
</compile_context>

<pallas_src>
import functools

import jax
import jax.numpy as jnp
from jax.experimental import pallas as pl
from jax.experimental.pallas import tpu as pltpu

# ---------------- hyperparameters (mirroring the PyTorch `params` dict) ------
EMBEDDING_DIM = 8     # params['embedding_dim']
N_MEMORY      = 5     # params['N']  (Conv1d in_channels)


def _state_repr_kernel(idx_ref, tab_ref, w_ref, b_ref, out_ref):
    """Fused gather + 1x1 Conv1d (weighted N-sum) + concat; batch on lanes.

    idx_ref : (N+1, Bt) int32  VMEM   row 0 = user id, rows 1..N = memory id + U
    tab_ref : (2E, V)   f32    VMEM   block-diag [[user_emb.T, 0], [0, item_emb.T]],
                                      V = U + I + 1 (pad column of item block = 0)
    w_ref   : (N,)      f32    SMEM   Conv1d weight (squeezed from (1, N, 1))
    b_ref   : (1,)      f32    SMEM   Conv1d bias
    out_ref : (3E, Bt)  f32    VMEM   [user ; user*drr ; drr] stacked on sublanes
    """
    n_rows, bt = idx_ref.shape
    n_mem = n_rows - 1
    two_e, vocab = tab_ref.shape
    emb = two_e // 2

    iota = jax.lax.broadcasted_iota(jnp.int32, (vocab, bt), 0)

    # Combined RHS over the packed table axis:
    #   rhs[v, b] = [v == uid[b]]  +  sum_n w[n] * [v == U + memory[n, b]]
    # The user one-hot initializes rhs; each item term is a select of w[n]
    # (no convert, no multiply) -> minimal VALU work, N unrolled.
    rhs = jnp.where(iota == idx_ref[0:1, :], 1.0, 0.0)
    for n in range(n_mem):
        rhs = rhs + jnp.where(iota == idx_ref[n + 1:n + 2, :], w_ref[n], 0.0)

    # ONE MXU contraction: rows 0:E -> user embedding, rows E:2E -> drr (pre-bias)
    fused = jnp.dot(tab_ref[...], rhs, preferred_element_type=jnp.float32)  # (2E, Bt)
    u = fused[0:emb, :]
    drr = fused[emb:two_e, :] + b_ref[0]

    # concat replaced by three direct, 8-sublane-aligned slab writes
    out_ref[0:emb, :] = u
    out_ref[emb:2 * emb, :] = u * drr
    out_ref[2 * emb:3 * emb, :] = drr


def _batch_tile(batch_padded):
    """Largest lane tile (<= 1024) that still leaves >= 2 grid steps (megacore)."""
    for t in (1024, 512, 256, 128):
        if batch_padded % t == 0 and batch_padded // t >= 2:
            return t
    return 128  # unreachable: batch_padded is always a multiple of 256


@functools.partial(jax.jit, static_argnames=("transpose_output",))
def state_repr_forward(user, memory, user_tab, item_tab, conv_w, conv_b,
                       *, transpose_output=True):
    """user: (B,) int, memory: (B, N) int, user_tab: (U, E), item_tab: (I+1, E),
    conv_w: (N,), conv_b: (1,).  Returns (B, 3E) or, if transpose_output=False,
    the lane-dense (3E, B) slab (no extra HBM round trip)."""
    batch = user.shape[0]
    n_mem = memory.shape[1]
    n_users, emb = user_tab.shape
    n_items1 = item_tab.shape[0]
    vocab = n_users + n_items1

    # Block-diagonal transposed table, derived from the LIVE parameters each
    # call (tiny: 2E x (U+I+1)); embed dim on sublanes, packed vocab on lanes.
    tab = jnp.zeros((2 * emb, vocab), jnp.float32)
    tab = tab.at[:emb, :n_users].set(user_tab.T.astype(jnp.float32))
    tab = tab.at[emb:, n_users:].set(item_tab.T.astype(jnp.float32))

    # Single packed (N+1, B) index slab: row 0 = user ids, rows 1..N = memory
    # ids offset by n_users so they address the item block of `tab`.
    idx = jnp.concatenate(
        [user.astype(jnp.int32).reshape(1, batch),
         memory.astype(jnp.int32).T + jnp.int32(n_users)], axis=0)

    # Pad the batch (lane axis) to a multiple of 256: full-width unmasked
    # stores and grid >= 2 so both v7x TensorCores are used.
    b_pad = ((batch + 255) // 256) * 256
    if b_pad != batch:
        idx = jnp.pad(idx, ((0, 0), (0, b_pad - batch)))

    bt = _batch_tile(b_pad)
    grid = (b_pad // bt,)

    out_t = pl.pallas_call(
        _state_repr_kernel,
        out_shape=jax.ShapeDtypeStruct((3 * emb, b_pad), jnp.float32),
        grid=grid,
        in_specs=[
            pl.BlockSpec((n_mem + 1, bt), lambda i: (0, i)),            # packed ids
            pl.BlockSpec((2 * emb, vocab), lambda i: (0, 0)),           # packed table
            pl.BlockSpec(memory_space=pltpu.MemorySpace.SMEM),          # conv weight
            pl.BlockSpec(memory_space=pltpu.MemorySpace.SMEM),          # conv bias
        ],
        out_specs=pl.BlockSpec((3 * emb, bt), lambda i: (0, i)),
        compiler_params=pltpu.CompilerParams(
            dimension_semantics=("parallel",)),                         # megacore on v7x
    )(idx, tab, conv_w, conv_b)

    out_t = out_t[:, :batch]          # drop lane padding
    if transpose_output:
        return out_t.T                # torch layout (B, 3E)
    return out_t                      # lane-dense (3E, B) for fused consumers


class StateReprModule:
    """Deterministically-initialized JAX twin of the PyTorch State_Repr_Module."""

    def __init__(self, user_num, item_num, embedding_dim, hidden_dim, key):
        del hidden_dim  # unused by forward (kept for parity with the PyTorch module)
        k_user, k_item, k_conv = jax.random.split(key, 3)
        # nn.init.normal_(std=0.01) for both embedding tables
        self.user_embeddings = 0.01 * jax.random.normal(
            k_user, (user_num, embedding_dim), dtype=jnp.float32)
        item_tbl = 0.01 * jax.random.normal(
            k_item, (item_num + 1, embedding_dim), dtype=jnp.float32)
        # padding_idx = item_num -> last row zeroed (keep it zero on any update,
        # as torch's padding_idx does by masking its gradient)
        self.item_embeddings = item_tbl.at[-1].set(0.0)
        # nn.init.uniform_(conv.weight) in [0, 1); conv.bias zeroed
        self.drr_ave_weight = jax.random.uniform(
            k_conv, (N_MEMORY,), dtype=jnp.float32)        # squeezed from (1, N, 1)
        self.drr_ave_bias = jnp.zeros((1,), dtype=jnp.float32)

    def __call__(self, user, memory):
        # TODO(synk): for large vocabularies the one-hot matmul gather is not
        # feasible (VMEM + O(vocab x B) VPU cost; v7x's 64 MiB VMEM bites first);
        # switch to a PrefetchScalarGridSpec / DMA row gather in that regime.
        return state_repr_forward(user, memory, self.user_embeddings,
                                  self.item_embeddings, self.drr_ave_weight,
                                  self.drr_ave_bias, transpose_output=True)

    def forward_lane_dense(self, user, memory):
        # Lane-dense (3E, B) output: skips the wrapper transpose (and its extra
        # HBM round trip) for downstream kernels that consume this layout.
        return state_repr_forward(user, memory, self.user_embeddings,
                                  self.item_embeddings, self.drr_ave_weight,
                                  self.drr_ave_bias, transpose_output=False)


if __name__ == "__main__":
    key = jax.random.PRNGKey(0)
    k_params, k_user, k_mem = jax.random.split(key, 3)

    USER_NUM, ITEM_NUM, HIDDEN_DIM = 10, 20, 16
    BATCH = 16

    module = StateReprModule(USER_NUM, ITEM_NUM, EMBEDDING_DIM, HIDDEN_DIM, k_params)

    user = jax.random.randint(k_user, (BATCH,), 0, USER_NUM, dtype=jnp.int32)
    # include the padding index (ITEM_NUM) occasionally, like real interaction memory
    memory = jax.random.randint(k_mem, (BATCH, N_MEMORY), 0, ITEM_NUM + 1, dtype=jnp.int32)

    out = jax.block_until_ready(module(user, memory))
    assert out.shape == (BATCH, 3 * EMBEDDING_DIM) and out.dtype == jnp.float32

    out_t = jax.block_until_ready(module.forward_lane_dense(user, memory))
    assert out_t.shape == (3 * EMBEDDING_DIM, BATCH)

    # Pure-JAX reference check of the fused kernel math.
    u_ref = jnp.take(module.user_embeddings, user, axis=0)
    i_ref = jnp.take(module.item_embeddings, memory, axis=0)
    drr_ref = jnp.einsum("n,bne->be", module.drr_ave_weight, i_ref,
                         precision=jax.lax.Precision.HIGHEST) + module.drr_ave_bias[0]
    ref = jnp.concatenate([u_ref, u_ref * drr_ref, drr_ref], axis=1)
    assert jnp.allclose(out, ref, atol=1e-3, rtol=1e-3), "mismatch vs pure-JAX reference"
    assert jnp.allclose(out_t.T, ref, atol=1e-3, rtol=1e-3), "lane-dense path mismatch"

    print("KERNEL_OK")
</pallas_src>

<mosaic_0001>
module attributes {stable_mosaic.version = 11 : i64} {
  func.func @_state_repr_kernel(%arg0: i32, %arg1: memref<6x128xi32, #tpu.memory_space<vmem>>, %arg2: memref<16x31xf32, #tpu.memory_space<vmem>>, %arg3: memref<5xf32, #tpu.memory_space<smem>>, %arg4: memref<1xf32, #tpu.memory_space<smem>>, %arg5: memref<24x128xf32, #tpu.memory_space<vmem>>) attributes {dimension_semantics = [#tpu.dimension_semantics<parallel>], iteration_bounds = array<i64: 2>, scalar_prefetch = 0 : i64, scratch_operands = 0 : i64, tpu.core_type = #tpu.core_type<tc>, window_params = [{transform_indices = @transform_0, window_bounds = array<i64: 6, 128>}, {pipeline_mode = #tpu.pipeline_mode<synchronous>, transform_indices = @transform_1, window_bounds = array<i64: 16, 31>}, {transform_indices = @transform_2, window_bounds = array<i64: 5>}, {transform_indices = @transform_3, window_bounds = array<i64: 1>}, {transform_indices = @transform_4, window_bounds = array<i64: 24, 128>}]} {
    %0 = tpu.iota {dimensions = array<i32: 0>} : vector<31x128xi32>
    %c0 = arith.constant 0 : index
    %c0_0 = arith.constant 0 : index
    %1 = vector.load %arg1[%c0, %c0_0] : memref<6x128xi32, #tpu.memory_space<vmem>>, vector<1x128xi32>
    %2 = vector.broadcast %1 : vector<1x128xi32> to vector<31x128xi32>
    %3 = arith.cmpi eq, %0, %2 : vector<31x128xi32>
    %cst = arith.constant 1.000000e+00 : f32
    %cst_1 = arith.constant 0.000000e+00 : f32
    %4 = vector.broadcast %cst : f32 to vector<31x128xf32>
    %5 = vector.broadcast %cst_1 : f32 to vector<31x128xf32>
    %6 = arith.select %3, %4, %5 : vector<31x128xi1>, vector<31x128xf32>
    %c1 = arith.constant 1 : index
    %c0_2 = arith.constant 0 : index
    %7 = vector.load %arg1[%c1, %c0_2] : memref<6x128xi32, #tpu.memory_space<vmem>>, vector<1x128xi32>
    %8 = vector.broadcast %7 : vector<1x128xi32> to vector<31x128xi32>
    %9 = arith.cmpi eq, %0, %8 : vector<31x128xi32>
    %c0_3 = arith.constant 0 : index
    %10 = memref.load %arg3[%c0_3] : memref<5xf32, #tpu.memory_space<smem>>
    %cst_4 = arith.constant 0.000000e+00 : f32
    %11 = vector.broadcast %10 : f32 to vector<31x128xf32>
    %12 = vector.broadcast %cst_4 : f32 to vector<31x128xf32>
    %13 = arith.select %9, %11, %12 : vector<31x128xi1>, vector<31x128xf32>
    %14 = arith.addf %6, %13 : vector<31x128xf32>
    %c2 = arith.constant 2 : index
    %c0_5 = arith.constant 0 : index
    %15 = vector.load %arg1[%c2, %c0_5] : memref<6x128xi32, #tpu.memory_space<vmem>>, vector<1x128xi32>
    %16 = vector.broadcast %15 : vector<1x128xi32> to vector<31x128xi32>
    %17 = arith.cmpi eq, %0, %16 : vector<31x128xi32>
    %c1_6 = arith.constant 1 : index
    %18 = memref.load %arg3[%c1_6] : memref<5xf32, #tpu.memory_space<smem>>
    %cst_7 = arith.constant 0.000000e+00 : f32
    %19 = vector.broadcast %18 : f32 to vector<31x128xf32>
    %20 = vector.broadcast %cst_7 : f32 to vector<31x128xf32>
    %21 = arith.select %17, %19, %20 : vector<31x128xi1>, vector<31x128xf32>
    %22 = arith.addf %14, %21 : vector<31x128xf32>
    %c3 = arith.constant 3 : index
    %c0_8 = arith.constant 0 : index
    %23 = vector.load %arg1[%c3, %c0_8] : memref<6x128xi32, #tpu.memory_space<vmem>>, vector<1x128xi32>
    %24 = vector.broadcast %23 : vector<1x128xi32> to vector<31x128xi32>
    %25 = arith.cmpi eq, %0, %24 : vector<31x128xi32>
    %c2_9 = arith.constant 2 : index
    %26 = memref.load %arg3[%c2_9] : memref<5xf32, #tpu.memory_space<smem>>
    %cst_10 = arith.constant 0.000000e+00 : f32
    %27 = vector.broadcast %26 : f32 to vector<31x128xf32>
    %28 = vector.broadcast %cst_10 : f32 to vector<31x128xf32>
    %29 = arith.select %25, %27, %28 : vector<31x128xi1>, vector<31x128xf32>
    %30 = arith.addf %22, %29 : vector<31x128xf32>
    %c4 = arith.constant 4 : index
    %c0_11 = arith.constant 0 : index
    %31 = vector.load %arg1[%c4, %c0_11] : memref<6x128xi32, #tpu.memory_space<vmem>>, vector<1x128xi32>
    %32 = vector.broadcast %31 : vector<1x128xi32> to vector<31x128xi32>
    %33 = arith.cmpi eq, %0, %32 : vector<31x128xi32>
    %c3_12 = arith.constant 3 : index
    %34 = memref.load %arg3[%c3_12] : memref<5xf32, #tpu.memory_space<smem>>
    %cst_13 = arith.constant 0.000000e+00 : f32
    %35 = vector.broadcast %34 : f32 to vector<31x128xf32>
    %36 = vector.broadcast %cst_13 : f32 to vector<31x128xf32>
    %37 = arith.select %33, %35, %36 : vector<31x128xi1>, vector<31x128xf32>
    %38 = arith.addf %30, %37 : vector<31x128xf32>
    %c5 = arith.constant 5 : index
    %c0_14 = arith.constant 0 : index
    %39 = vector.load %arg1[%c5, %c0_14] : memref<6x128xi32, #tpu.memory_space<vmem>>, vector<1x128xi32>
    %40 = vector.broadcast %39 : vector<1x128xi32> to vector<31x128xi32>
    %41 = arith.cmpi eq, %0, %40 : vector<31x128xi32>
    %c4_15 = arith.constant 4 : index
    %42 = memref.load %arg3[%c4_15] : memref<5xf32, #tpu.memory_space<smem>>
    %cst_16 = arith.constant 0.000000e+00 : f32
    %43 = vector.broadcast %42 : f32 to vector<31x128xf32>
    %44 = vector.broadcast %cst_16 : f32 to vector<31x128xf32>
    %45 = arith.select %41, %43, %44 : vector<31x128xi1>, vector<31x128xf32>
    %46 = arith.addf %38, %45 : vector<31x128xf32>
    %c0_17 = arith.constant 0 : index
    %c0_18 = arith.constant 0 : index
    %47 = vector.load %arg2[%c0_17, %c0_18] : memref<16x31xf32, #tpu.memory_space<vmem>>, vector<16x31xf32>
    %cst_19 = arith.constant dense<0.000000e+00> : vector<16x128xf32>
    %48 = tpu.matmul %47, %46, %cst_19 {dimension_numbers = #tpu.dot_dimension_numbers<[1], [0], [0], [1], [0, 0, 1, 1], [], []>} : vector<16x31xf32>, vector<31x128xf32>, vector<16x128xf32> -> vector<16x128xf32>
    %49 = vector.extract_strided_slice %48 {offsets = [0, 0], sizes = [8, 128], strides = [1, 1]} : vector<16x128xf32> to vector<8x128xf32>
    %50 = vector.extract_strided_slice %48 {offsets = [8, 0], sizes = [8, 128], strides = [1, 1]} : vector<16x128xf32> to vector<8x128xf32>
    %c0_20 = arith.constant 0 : index
    %51 = memref.load %arg4[%c0_20] : memref<1xf32, #tpu.memory_space<smem>>
    %52 = vector.broadcast %51 : f32 to vector<8x128xf32>
    %53 = arith.addf %50, %52 : vector<8x128xf32>
    %c0_21 = arith.constant 0 : index
    %c0_22 = arith.constant 0 : index
    %54 = vector.load %arg5[%c0_21, %c0_22] : memref<24x128xf32, #tpu.memory_space<vmem>>, vector<8x128xf32>
    tpu.vector_store %arg5[%c0_21, %c0_22], %49 {strides = array<i32>} : memref<24x128xf32, #tpu.memory_space<vmem>>, vector<8x128xf32>,
    %55 = arith.mulf %49, %53 : vector<8x128xf32>
    %c8 = arith.constant 8 : index
    %c0_23 = arith.constant 0 : index
    %56 = vector.load %arg5[%c8, %c0_23] : memref<24x128xf32, #tpu.memory_space<vmem>>, vector<8x128xf32>
    tpu.vector_store %arg5[%c8, %c0_23], %55 {strides = array<i32>} : memref<24x128xf32, #tpu.memory_space<vmem>>, vector<8x128xf32>,
    %c16 = arith.constant 16 : index
    %c0_24 = arith.constant 0 : index
    %57 = vector.load %arg5[%c16, %c0_24] : memref<24x128xf32, #tpu.memory_space<vmem>>, vector<8x128xf32>
    tpu.vector_store %arg5[%c16, %c0_24], %53 {strides = array<i32>} : memref<24x128xf32, #tpu.memory_space<vmem>>, vector<8x128xf32>,
    return
  }
  func.func @transform_0(%arg0: i32) -> (i32, i32) {
    %c0_i32 = arith.constant 0 : i32
    %c0_i32_0 = arith.constant 0 : i32
    return %c0_i32, %arg0 : i32, i32
  }
  func.func @transform_1(%arg0: i32) -> (i32, i32) {
    %c0_i32 = arith.constant 0 : i32
    %c0_i32_0 = arith.constant 0 : i32
    %c0_i32_1 = arith.constant 0 : i32
    return %c0_i32, %c0_i32_0 : i32, i32
  }
  func.func @transform_2(%arg0: i32) -> i32 {
    %c0_i32 = arith.constant 0 : i32
    %c0_i32_0 = arith.constant 0 : i32
    return %c0_i32 : i32
  }
  func.func @transform_3(%arg0: i32) -> i32 {
    %c0_i32 = arith.constant 0 : i32
    %c0_i32_0 = arith.constant 0 : i32
    return %c0_i32 : i32
  }
  func.func @transform_4(%arg0: i32) -> (i32, i32) {
    %c0_i32 = arith.constant 0 : i32
    %c0_i32_0 = arith.constant 0 : i32
    return %c0_i32, %arg0 : i32, i32
  }
}

</mosaic_0001>

<bundles_post_ra>
// kernel: state_repr_forward.1
= control target key start
LH: loop header
LB: loop body
LE: loop exit
PB: predicated region body
PF: predicated region fallthrough
CT: control target
= control target key end

     0   :  { %s815_s0 = inlined_call_operand.vmem [shape: s32[6,256], index: 0, kind: input, shape index: {}]   ;;  %s816_s1 = inlined_call_operand.vmem [shape: f32[16,31], index: 1, kind: input, shape index: {}]   ;;  %s817_s2 = inlined_call_operand.vmem [shape: f32[5], index: 2, kind: input, shape index: {}]   ;;  %s818_s3 = inlined_call_operand.<no memory space> [shape: f32[1], index: 3, kind: input, shape index: {}]   ;;  %s819_s4 = inlined_call_operand.vmem [shape: f32[24,256], index: 4, kind: output, shape index: {}]  }
   0x1   :  { %9 = sst [smem:[#allocation2]] %s818_s3 }
   0x2   :  { %10 = vsyncpa [#allocation4], 0  ;;  %s675_s17 = smov 0   ;;  %s677_s18 = smov 0  }
   0x3   :  { %s679_s19 = smov 0  }
   0x4 LB: > { %s688_s3 = sadd.s32 4294967295, %s643_s19   ;;  %s690_s20 = sadd.s32 1, %s643_s19   ;;  %s643_s19 = sphi %s679_s19, %s824_s19   ;;  %s639_s18 = sphi %s677_s18, %s823_s18   ;;  %s635_s17 = sphi %s675_s17, %s822_s17  }
   0x5   : > { %s109_s21 = ssub.s32 %s643_s19, %s690_s20  ;;  %s112_s22 = sadd.s32 1, %s639_s18 }
   0x6   : > { %p110_p0 = scmp.eq.s32.totalorder %s109_s21, 0  ;;  %p122_p1 = scmp.ne.s32.totalorder %s639_s18, %s635_s17 }
   0x7   : > { %p123_p2 = scmp.eq.s32.totalorder %s688_s3, 1  ;;  %p526_p3 = scmp.ge.s32.totalorder %s643_s19, 1 }
   0x8   : > { %s698_s23 = scalar_select %p110_p0, %s639_s18, %s112_s22  }
   0x9   : > { %p700_p4 = por %p123_p2, %p122_p1  ;;  %p136_p5 = scmp.lt.s32.totalorder %s643_s19, 3 }
   0xa   : > { %p574_p6 = scmp.eq.s32.totalorder %s688_s3, 0  ;;  %s152_s28 = sshll.u32 %s817_s2, 4  ;;  %s153_s28 = int_to_ptr.vmem [resolvable:$true] %s152_s28 }
   0xb   : > { %p705_p7 = pnand %p526_p3, %p136_p5  ;;  %s602_s29 = scalar_lea.vmem %s153_s28, 16 }
   0xc   : > { %p603_p10 = scmp.ne.s32.totalorder %s153_s28, %s602_s29  ;;  %p610_p0 = scmp.lt.s32.totalorder %s153_s28, %s153_s28 }
   0xd   : > { %p570_p8 = pneg %p705_p7  ;;  %p611_p1 = scmp.lt.s32.totalorder %s602_s29, %s602_s29 }
   0xf   : > { %p571_p9 = pnand %p574_p6, %p570_p8  ;;  %p612_p2 = por %p611_p1, %p610_p0 }
  0x11   : > { %p604_p11 = pneg %p571_p9 }
  0x13   : > { %p605_p12 = pnand %p604_p11, %p603_p10 }
  0x15   : > { %p606_p13 = pneg %p605_p12 }
  0x17   : > { %p613_p3 = pnand %p612_p2, %p606_p13 }
  0x19   : > { %616 = shalt.err (!%p613_p3)
}
  0x1a   : > { %s645_s30 = smov [#allocation3]   ;;  %175 = sbr.rel (%p705_p7) target bundleno = 274 (0x112), region = 36 }
  0x1b   : > { %573 = dma.vmem_to_smem (!%p571_p9), %s153_s28, 16, %s645_s30, [#allocation4]  }
  0x1f   : > { %630 = dma.done.wait (%p574_p6), [#allocation4], 16  }
  0x20   : > { %632 = vsyncadd (%p574_p6), [#allocation4], 4294967280 }
  0x21   : > { %181 = sfence }
  0x22   : > { %p200_p5 = scmp.lt.s32.totalorder %s688_s3, 1  ;;  %v204_v0 = vlaneseq  ;;  %s231_s5 = sld [smem:[#allocation3]]  ;;  %v317_v1 = vld [vmem:[%s816_s1] sm:$0xff]  ;;  %vm319_vm0 = vcmask 252928   ;;  %v646_v14 = vmov 0.0   ;;  %vm326_vm9 = vcmask 1046528  }
  0x23   : > { %s535_s8 = sld [smem:[#allocation3 + $0x1]]  ;;  %562 = vmatprep.mubr.msk.f32.mxu0 %vm319_vm0, %v317_v1  ;;  %v318_v62 = vld [vmem:[%s816_s1 + $0x8] sm:$0xff]  ;;  %s197_s25 = sand.u32 1, %s635_s17  }
  0x24   : > { %s201_s9 = scalar_select %p200_p5, %s688_s3, 1  ;;  %v727_v2 = vshrl.u32 %v204_v0, 7 }
  0x25   : > { %s537_s10 = sld [smem:[#allocation3 + $0x2]]  ;;  %s565_s26 = smul.u32 24, %s197_s25 }
  0x26   : > { %s531_s11 = sshll.u32 %s201_s9, 3  ;;  %v208_v3 = vadd.s32 24, %v727_v2  ;;  %s539_s12 = sld [smem:[#allocation3 + $0x3]]  ;;  %v207_v4 = vadd.s32 16, %v727_v2  ;;  %v736_v5 = vadd.s32 8, %v727_v2 }
  0x27   : > { %s203_s15 = scalar_lea.vmem %s815_s0, %s531_s11  ;;  %s541_s16 = sld [smem:[#allocation3 + $0x4]] }
  0x28   : > { %v738_v6 = vld [vmem:[%s203_s15] ss:$0 sm:$0xff]  ;;  %v740_v7 = vld [vmem:[%s203_s15 + $0x1] ss:$0 sm:$0xff]  ;;  %v742_v8 = vstv %s231_s5  ;;  %v744_v9 = vld [vmem:[%s203_s15 + $0x2] ss:$0 sm:$0xff] }
  0x29   : > { %vm217_vm1 = vcmp.eq.s32.totalorder %v208_v3, %v738_v6  ;;  %vm230_vm2 = vcmp.eq.s32.totalorder %v208_v3, %v740_v7  ;;  %vm249_vm3 = vcmp.eq.s32.totalorder %v208_v3, %v744_v9  ;;  %v251_v10 = vstv %s535_s8  ;;  %v749_v11 = vld [vmem:[%s203_s15 + $0x3] ss:$0 sm:$0xff]  ;;  %v751_v12 = vld [vmem:[%s203_s15 + $0x4] ss:$0 sm:$0xff]  ;;  %v753_v13 = vld [vmem:[%s203_s15 + $0x5] ss:$0 sm:$0xff] }
  0x2a   : > { %v221_v15 = vsel %vm217_vm1, 1.0, %v646_v14  ;;  %v236_v16 = vsel %vm230_vm2, %v742_v8, 0.0  ;;  %v255_v17 = vsel %vm249_vm3, %v251_v10, 0.0  ;;  %vm268_vm4 = vcmp.eq.s32.totalorder %v208_v3, %v749_v11  ;;  %s405_s22 = sld [smem:[#allocation2]]  ;;  %s199_s27 = scalar_lea.vmem [#allocation5], %s565_s26 }
  0x2b   : > { %v240_v18 = vadd.f32 %v236_v16, %v221_v15  ;;  %v270_v19 = vstv %s537_s10  ;;  %vm287_vm5 = vcmp.eq.s32.totalorder %v208_v3, %v751_v12  ;;  %vm306_vm6 = vcmp.eq.s32.totalorder %v208_v3, %v753_v13  ;;  %s545_s28 = sshll.u32 (%p700_p4), %s688_s3, 3 }
  0x2c   : > { %v274_v20 = vsel %vm268_vm4, %v270_v19, 0.0  ;;  %v289_v21 = vstv %s539_s12  ;;  %vm216_vm7 = vcmp.eq.s32.totalorder %v207_v4, %v738_v6  ;;  %vm229_vm8 = vcmp.eq.s32.totalorder %v207_v4, %v740_v7  ;;  %s420_s30 = scalar_lea.vmem (%p700_p4), %s819_s4, %s545_s28 }
  0x2d   : > { %v259_v22 = vadd.f32 %v255_v17, %v240_v18  ;;  %v308_v23 = vstv %s541_s16  ;;  %v220_v24 = vsel %vm216_vm7, 1.0, %v646_v14  ;;  %v293_v25 = vsel %vm287_vm5, %v289_v21, 0.0 }
  0x2e   : > { %v235_v26 = vsel %vm229_vm8, %v742_v8, 0.0  ;;  %vm248_vm10 = vcmp.eq.s32.totalorder %v207_v4, %v744_v9  ;;  %vm267_vm11 = vcmp.eq.s32.totalorder %v207_v4, %v749_v11  ;;  %v312_v28 = vsel %vm306_vm6, %v308_v23, 0.0 }
  0x2f   : > { %v278_v27 = vadd.f32 %v274_v20, %v259_v22  ;;  %v239_v29 = vadd.f32 %v235_v26, %v220_v24  ;;  %v254_v30 = vsel %vm248_vm10, %v251_v10, 0.0  ;;  %v273_v31 = vsel %vm267_vm11, %v270_v19, 0.0 }
  0x30   : > { %vm286_vm12 = vcmp.eq.s32.totalorder %v207_v4, %v751_v12  ;;  %vm215_vm13 = vcmp.eq.s32.totalorder %v736_v5, %v738_v6  ;;  %vm228_vm14 = vcmp.eq.s32.totalorder %v736_v5, %v740_v7  ;;  %vm305_vm15 = vcmp.eq.s32.totalorder %v207_v4, %v753_v13 }
  0x31   : > { %v297_v32 = vadd.f32 %v293_v25, %v278_v27  ;;  %v258_v33 = vadd.f32 %v254_v30, %v239_v29  ;;  %v292_v34 = vsel %vm286_vm12, %v289_v21, 0.0  ;;  %v219_v35 = vsel %vm215_vm13, 1.0, %v646_v14 }
  0x32   : > { %v234_v36 = vsel %vm228_vm14, %v742_v8, 0.0  ;;  %vm247_vm1 = vcmp.eq.s32.totalorder %v736_v5, %v744_v9  ;;  %vm266_vm2 = vcmp.eq.s32.totalorder %v736_v5, %v749_v11  ;;  %v311_v41 = vsel %vm305_vm15, %v308_v23, 0.0 }
  0x33   : > { %v316_v37 = vadd.f32 %v312_v28, %v297_v32  ;;  %v277_v38 = vadd.f32 %v273_v31, %v258_v33  ;;  %v238_v39 = vadd.f32 %v234_v36, %v219_v35  ;;  %v253_v40 = vsel %vm247_vm1, %v251_v10, 0.0 }
  0x34   : > { %v272_v42 = vsel %vm266_vm2, %v270_v19, 0.0  ;;  %vm285_vm3 = vcmp.eq.s32.totalorder %v736_v5, %v751_v12  ;;  %vm214_vm4 = vcmp.eq.s32.totalorder %v727_v2, %v738_v6  ;;  %vm304_vm5 = vcmp.eq.s32.totalorder %v736_v5, %v753_v13 }
  0x35   : > { %554 = vmatprep.subr.msk.mxu0 %vm326_vm9, %v316_v37  ;;  %v296_v43 = vadd.f32 %v292_v34, %v277_v38  ;;  %v257_v44 = vadd.f32 %v253_v40, %v238_v39  ;;  %v291_v45 = vsel %vm285_vm3, %v289_v21, 0.0  ;;  %v218_v46 = vsel %vm214_vm4, 1.0, %v646_v14 }
  0x36   : > { %555 = vmatpush3.msk.msra.mxu0 %vm326_vm9, %v316_v37  ;;  %vm227_vm6 = vcmp.eq.s32.totalorder %v727_v2, %v740_v7  ;;  %vm246_vm7 = vcmp.eq.s32.totalorder %v727_v2, %v744_v9  ;;  %vm265_vm8 = vcmp.eq.s32.totalorder %v727_v2, %v749_v11  ;;  %v310_v51 = vsel %vm304_vm5, %v308_v23, 0.0 }
  0x37   : > { %v315_v47 = vadd.f32 %v311_v41, %v296_v43  ;;  %v276_v48 = vadd.f32 %v272_v42, %v257_v44  ;;  %v233_v49 = vsel %vm227_vm6, %v742_v8, 0.0  ;;  %v252_v50 = vsel %vm246_vm7, %v251_v10, 0.0 }
  0x38   : > { %v237_v52 = vadd.f32 %v233_v49, %v218_v46  ;;  %vm284_vm9 = vcmp.eq.s32.totalorder %v727_v2, %v751_v12  ;;  %v271_v54 = vsel %vm265_vm8, %v270_v19, 0.0  ;;  %vm303_vm10 = vcmp.eq.s32.totalorder %v727_v2, %v753_v13 }
  0x39   : > { %556 = vmatprep.subr.mxu0 %v315_v47  ;;  %v295_v53 = vadd.f32 %v291_v45, %v276_v48  ;;  %v290_v57 = vsel %vm284_vm9, %v289_v21, 0.0  ;;  %v309_v59 = vsel %vm303_vm10, %v308_v23, 0.0  ;;  %v406_v63 = vstv %s405_s22 }
  0x3a   : > { %557 = vmatpush3.msra.mxu0 %v315_v47  ;;  %v256_v55 = vadd.f32 %v252_v50, %v237_v52 }
  0x3b   : > { %v314_v56 = vadd.f32 %v310_v51, %v295_v53 }
  0x3c   : > { %v275_v58 = vadd.f32 %v271_v54, %v256_v55 }
  0x3d   : > { %558 = vmatprep.subr.mxu0 %v314_v56 }
  0x3e   : > { %559 = vmatpush3.msra.mxu0 %v314_v56  ;;  %v294_v60 = vadd.f32 %v290_v57, %v275_v58 }
  0x40   : > { %v313_v61 = vadd.f32 %v309_v59, %v294_v60 }
  0x42   : > { %560 = vmatprep.subr.mxu0 %v313_v61 }
  0x43   : > { %561 = vmatpush3.msra.mxu0 %v313_v61 }
  0x44   : > { %563 = vmatmul.mubr.msk.f32.vlgmr.msra.gmra.mxu0 %vm319_vm0, %v318_v62 }
 0x104   : > { %v564_v0 = vpop.f32.mrf.mxu0 }
 0x105   : > { %v407_v1 = vadd.f32 %v564_v0, %v406_v63  ;;  %418 = sbr.rel (!%p700_p4) target bundleno = 274 (0x112), region = 44 }
 0x106   : > { %v396_v2 = vpop.f32.mrf.mxu0 }
 0x107   : > { %411 = vst [vmem:[%s199_s27 + $0x10] sm:$0xff] %v407_v1  ;;  %408 = vst [vmem:[%s199_s27] sm:$0xff] %v396_v2  ;;  %v409_v3 = vmul.f32 %v407_v1, %v396_v2 }
 0x109   : > { %410 = vst [vmem:[%s199_s27 + $0x8] sm:$0xff] %v409_v3 }
 0x10e   : > { %v453_v4 = vld [vmem:[%s199_s27] sm:$0xff]  ;;  %v457_v6 = vld [vmem:[%s199_s27 + $0x10] sm:$0xff] }
 0x10f   : > { %454 = vst [vmem:[%s420_s30] sm:$0xff] %v453_v4  ;;  %458 = vst [vmem:[%s420_s30 + $0x20] sm:$0xff] %v457_v6 }
 0x110   : > { %v455_v5 = vld [vmem:[%s199_s27 + $0x8] sm:$0xff] }
 0x111   : > { %456 = vst [vmem:[%s420_s30 + $0x10] sm:$0xff] %v455_v5 }
 0x112 PF: > { %p13_p6 = scmp.ge.s32.totalorder %s690_s20, 4   ;;  %s822_s17 = smov %s639_s18 }
 0x113   : > { %s823_s18 = smov %s698_s23  ;;  %s824_s19 = smov %s690_s20 }
 0x114   :  { %15 = sbr.rel (!%p13_p6) target bundleno = 4 (0x4), region = 109 }
 0x119   :  { %474 = vsyncpa [#allocation4], 1 }
 0x11a   :  { %476 = vsyncpa [#allocation4 + $0x1], 1 }

</bundles_post_ra>
